<compile_context>
chip_gen: v6e
topology: v6e:2x2x1
jax: 0.10.0
libtpu: 0.0.40
codegen_flags: <defaults>
</compile_context>

<pallas_src>
import functools

import jax
import jax.numpy as jnp
from jax.experimental import pallas as pl
from jax.experimental.pallas import tpu as pltpu


def _round_up(n, m):
    return ((n + m - 1) // m) * m


def _elu(x):
    # torch.nn.ELU(alpha=1.0); min() keeps exp() finite in the dead branch.
    return jnp.where(x > 0, x, jnp.exp(jnp.minimum(x, 0.0)) - 1.0)


# ----------------------------- Pallas kernel ------------------------------ #

def _tempo_block_kernel(x_ref, *refs, inv_len, acts):
    """Fused TempoBlock forward for one batch tile.

    x_ref : (TB, C, L) bf16 input tile (NCW layout)
    refs  : w0, b0, w1, b1, ..., out_ref
            weights pre-transposed to (in, out) in bf16; biases (1, out) fp32
    acts  : static tuple[bool] — apply ELU after layer i
    """
    out_ref = refs[-1]
    wb = refs[:-1]

    # nn.AdaptiveAvgPool1d(1) + squeeze: mean over the time/lane axis.
    # Keep as an XLU lane-reduction with fp32 accumulation (do NOT turn into
    # a matmul — the XLU slot is free relative to the HBM/store bottleneck).
    h = jnp.sum(x_ref[...].astype(jnp.float32), axis=-1) * inv_len       # (TB, C)

    # TODO(synk): nn.Dropout(p=dropout_rate) is identity at inference time;
    # train-mode dropout (RNG mask) is not implemented here.

    for i, act in enumerate(acts):
        w = wb[2 * i][...]                                                # (in, out) bf16
        b = wb[2 * i + 1][...]                                            # (1, out)  fp32
        h = jnp.dot(h.astype(w.dtype), w,
                    preferred_element_type=jnp.float32) + b               # bf16 MXU, f32 acc
        if act:
            h = _elu(h)                                                   # fp32 EUP/VPU

    out_ref[...] = h.astype(out_ref.dtype)                                # lane-dense store


# --------------------------- parameter preparation ------------------------ #

def prepare_params(params, *, mode="classification", include_top=True,
                   add_proj_head=False, compute_dtype=jnp.bfloat16,
                   lane_multiple=128):
    """One-time layout prep: transpose to (in,out), bias->(1,out), cast weights
    to bf16, zero-pad the final head width to a multiple of 128."""
    if mode not in ("classification", "regression"):
        raise ValueError("TCN mode must be one of ['classification', 'regression']")

    layers = [(params["w_dense"], params["b_dense"], True)]
    if add_proj_head:
        layers.append((params["w_proj"], params["b_proj"], True))
    if include_top:
        if mode == "classification":
            layers.append((params["w_out"], params["b_out"], False))
        else:
            layers.append((params["w_out_reg"], params["b_out_reg"], False))

    flat, acts = [], []
    for idx, (w, b, act) in enumerate(layers):
        wt = jnp.asarray(w, jnp.float32).T.astype(compute_dtype)   # (in, out)
        br = jnp.asarray(b, jnp.float32).reshape(1, -1)            # (1, out) fp32
        if idx == len(layers) - 1:
            true_out = wt.shape[-1]
            pad = (-true_out) % lane_multiple
            if pad:
                wt = jnp.pad(wt, ((0, 0), (0, pad)))
                br = jnp.pad(br, ((0, 0), (0, pad)))
        flat.append(wt)
        flat.append(br)
        acts.append(act)

    return dict(flat=tuple(flat), acts=tuple(acts),
                out_dim=true_out, padded_out=flat[-2].shape[-1],
                compute_dtype=compute_dtype)


# ------------------------------ host wrapper ------------------------------ #

def tempo_block_forward(x, prepped, *, tb=None):
    B, C, L = x.shape
    flat = prepped["flat"]
    acts = prepped["acts"]
    out_pad = prepped["padded_out"]
    cdt = prepped["compute_dtype"]

    # Batch tile: multiple of 16 (bf16 sublane packing).  For huge batches
    # size TB from VMEM:  2*(TB*C*L*2B) + 2*(TB*out_pad*4B) + weights
    # <= ~24-28 MiB on v7x (64 MiB phys), roughly 2x that on v5e/v6e.
    if tb is None:
        tb = min(512, _round_up(max(B, 1), 16))
    b_pad = _round_up(B, tb)

    x = jnp.asarray(x).astype(cdt)
    if b_pad != B:
        x = jnp.pad(x, ((0, b_pad - B), (0, 0), (0, 0)))

    kernel = functools.partial(_tempo_block_kernel,
                               inv_len=1.0 / L, acts=acts)

    # x is batch-tiled (pipelined DMA); weights/biases use constant index_maps
    # so they stay resident in VMEM across all grid steps.
    in_specs = [pl.BlockSpec((tb, C, L), lambda i: (i, 0, 0))]
    for arr in flat:
        in_specs.append(pl.BlockSpec(arr.shape, lambda i: (0, 0)))

    out = pl.pallas_call(
        kernel,
        grid=(b_pad // tb,),
        out_shape=jax.ShapeDtypeStruct((b_pad, out_pad), jnp.float32),
        in_specs=in_specs,
        out_specs=pl.BlockSpec((tb, out_pad), lambda i: (i, 0)),
        compiler_params=pltpu.CompilerParams(
            dimension_semantics=("parallel",)),
    )(x, *flat)

    return out[:B, :prepped["out_dim"]]


# --------------------------- params / reference --------------------------- #

def init_params(key, in_features, num_units, output_units, proj_head_dim):
    ks = jax.random.split(key, 8)
    s = 0.1
    return dict(
        w_dense=s * jax.random.normal(ks[0], (num_units, in_features), jnp.float32),
        b_dense=s * jax.random.normal(ks[1], (num_units,), jnp.float32),
        w_proj=s * jax.random.normal(ks[2], (proj_head_dim, num_units), jnp.float32),
        b_proj=s * jax.random.normal(ks[3], (proj_head_dim,), jnp.float32),
        w_out=s * jax.random.normal(ks[4], (output_units, num_units), jnp.float32),
        b_out=s * jax.random.normal(ks[5], (output_units,), jnp.float32),
        w_out_reg=s * jax.random.normal(ks[6], (1, num_units), jnp.float32),
        b_out_reg=s * jax.random.normal(ks[7], (1,), jnp.float32),
    )


def ref_forward(x, params, *, mode="classification", include_top=True,
                add_proj_head=False):
    """Pure-JAX fp32 reference of TempoBlock.forward (inference mode)."""
    h = jnp.mean(x, axis=-1)                                        # pool + squeeze
    h = _elu(h @ params["w_dense"].T + params["b_dense"])           # dense + ELU
    if add_proj_head:
        h = _elu(h @ params["w_proj"].T + params["b_proj"])
    if include_top:
        if mode == "classification":
            h = h @ params["w_out"].T + params["b_out"]
        else:
            h = h @ params["w_out_reg"].T + params["b_out_reg"]
    return h


# ---------------------------------- main ----------------------------------- #

if __name__ == "__main__":
    B, IN_FEATURES, L = 2, 16, 128          # L = 128 -> lane-dense pooling axis
    NUM_UNITS, OUTPUT_UNITS, PROJ_DIM = 16, 300, 16   # module defaults

    key = jax.random.PRNGKey(0)
    k_x, k_p = jax.random.split(key)
    x = jax.random.normal(k_x, (B, IN_FEATURES, L), jnp.float32)
    params = init_params(k_p, IN_FEATURES, NUM_UNITS, OUTPUT_UNITS, PROJ_DIM)

    # classification head (default config)
    prepped_cls = prepare_params(params, mode="classification")
    out = jax.block_until_ready(tempo_block_forward(x, prepped_cls))
    ref = ref_forward(x, params, mode="classification")
    assert out.shape == (B, OUTPUT_UNITS), out.shape
    assert jnp.allclose(out, ref, atol=2e-2, rtol=2e-2), \
        f"cls max abs err {float(jnp.max(jnp.abs(out - ref)))}"

    # regression head (exercises padding 1 -> 128)
    prepped_reg = prepare_params(params, mode="regression")
    out_r = jax.block_until_ready(tempo_block_forward(x, prepped_reg))
    ref_r = ref_forward(x, params, mode="regression")
    assert out_r.shape == (B, 1), out_r.shape
    assert jnp.allclose(out_r, ref_r, atol=2e-2, rtol=2e-2), \
        f"reg max abs err {float(jnp.max(jnp.abs(out_r - ref_r)))}"

    print("KERNEL_OK")
</pallas_src>

<mosaic_0001>
module attributes {stable_mosaic.version = 11 : i64} {
  func.func @_tempo_block_kernel(%arg0: i32, %arg1: memref<16x16x128xbf16, #tpu.memory_space<vmem>>, %arg2: memref<16x16xbf16, #tpu.memory_space<vmem>>, %arg3: memref<1x16xf32, #tpu.memory_space<vmem>>, %arg4: memref<16x384xbf16, #tpu.memory_space<vmem>>, %arg5: memref<1x384xf32, #tpu.memory_space<vmem>>, %arg6: memref<16x384xf32, #tpu.memory_space<vmem>>) attributes {dimension_semantics = [#tpu.dimension_semantics<parallel>], iteration_bounds = array<i64: 1>, scalar_prefetch = 0 : i64, scratch_operands = 0 : i64, tpu.core_type = #tpu.core_type<tc>, window_params = [{transform_indices = @transform_0, window_bounds = array<i64: 16, 16, 128>}, {pipeline_mode = #tpu.pipeline_mode<synchronous>, transform_indices = @transform_1, window_bounds = array<i64: 16, 16>}, {pipeline_mode = #tpu.pipeline_mode<synchronous>, transform_indices = @transform_2, window_bounds = array<i64: 1, 16>}, {pipeline_mode = #tpu.pipeline_mode<synchronous>, transform_indices = @transform_3, window_bounds = array<i64: 16, 384>}, {pipeline_mode = #tpu.pipeline_mode<synchronous>, transform_indices = @transform_4, window_bounds = array<i64: 1, 384>}, {transform_indices = @transform_5, window_bounds = array<i64: 16, 384>}]} {
    %c0 = arith.constant 0 : index
    %c0_0 = arith.constant 0 : index
    %c0_1 = arith.constant 0 : index
    %0 = vector.load %arg1[%c0, %c0_0, %c0_1] : memref<16x16x128xbf16, #tpu.memory_space<vmem>>, vector<16x16x128xbf16>
    %1 = arith.extf %0 : vector<16x16x128xbf16> to vector<16x16x128xf32>
    %cst = arith.constant dense<0.000000e+00> : vector<16x16xf32>
    %2 = vector.multi_reduction <add>, %1, %cst [2] : vector<16x16x128xf32> to vector<16x16xf32>
    %cst_2 = arith.constant 7.812500e-03 : f32
    %3 = vector.broadcast %cst_2 : f32 to vector<16x16xf32>
    %4 = arith.mulf %2, %3 : vector<16x16xf32>
    %c0_3 = arith.constant 0 : index
    %c0_4 = arith.constant 0 : index
    %5 = vector.load %arg2[%c0_3, %c0_4] : memref<16x16xbf16, #tpu.memory_space<vmem>>, vector<16x16xbf16>
    %c0_5 = arith.constant 0 : index
    %c0_6 = arith.constant 0 : index
    %6 = vector.load %arg3[%c0_5, %c0_6] : memref<1x16xf32, #tpu.memory_space<vmem>>, vector<1x16xf32>
    %7 = arith.truncf %4 : vector<16x16xf32> to vector<16x16xbf16>
    %cst_7 = arith.constant dense<0.000000e+00> : vector<16x16xf32>
    %8 = tpu.matmul %7, %5, %cst_7 {dimension_numbers = #tpu.dot_dimension_numbers<[1], [0], [0], [1], [0, 0, 1, 1], [], []>} : vector<16x16xbf16>, vector<16x16xbf16>, vector<16x16xf32> -> vector<16x16xf32>
    %9 = vector.broadcast %6 : vector<1x16xf32> to vector<16x16xf32>
    %10 = arith.addf %8, %9 : vector<16x16xf32>
    %cst_8 = arith.constant 0.000000e+00 : f32
    %11 = vector.broadcast %cst_8 : f32 to vector<16x16xf32>
    %12 = arith.cmpf ogt, %10, %11 : vector<16x16xf32>
    %cst_9 = arith.constant 0.000000e+00 : f32
    %13 = vector.broadcast %cst_9 : f32 to vector<16x16xf32>
    %14 = arith.minimumf %10, %13 : vector<16x16xf32>
    %15 = math.exp %14 : vector<16x16xf32>
    %cst_10 = arith.constant 1.000000e+00 : f32
    %16 = vector.broadcast %cst_10 : f32 to vector<16x16xf32>
    %17 = arith.subf %15, %16 : vector<16x16xf32>
    %18 = arith.select %12, %10, %17 : vector<16x16xi1>, vector<16x16xf32>
    %c0_11 = arith.constant 0 : index
    %c0_12 = arith.constant 0 : index
    %19 = vector.load %arg4[%c0_11, %c0_12] : memref<16x384xbf16, #tpu.memory_space<vmem>>, vector<16x384xbf16>
    %c0_13 = arith.constant 0 : index
    %c0_14 = arith.constant 0 : index
    %20 = vector.load %arg5[%c0_13, %c0_14] : memref<1x384xf32, #tpu.memory_space<vmem>>, vector<1x384xf32>
    %21 = arith.truncf %18 : vector<16x16xf32> to vector<16x16xbf16>
    %cst_15 = arith.constant dense<0.000000e+00> : vector<16x384xf32>
    %22 = tpu.matmul %21, %19, %cst_15 {dimension_numbers = #tpu.dot_dimension_numbers<[1], [0], [0], [1], [0, 0, 1, 1], [], []>} : vector<16x16xbf16>, vector<16x384xbf16>, vector<16x384xf32> -> vector<16x384xf32>
    %23 = vector.broadcast %20 : vector<1x384xf32> to vector<16x384xf32>
    %24 = arith.addf %22, %23 : vector<16x384xf32>
    %c0_16 = arith.constant 0 : index
    %c0_17 = arith.constant 0 : index
    %25 = vector.load %arg6[%c0_16, %c0_17] : memref<16x384xf32, #tpu.memory_space<vmem>>, vector<16x384xf32>
    tpu.vector_store %arg6[%c0_16, %c0_17], %24 {strides = array<i32>} : memref<16x384xf32, #tpu.memory_space<vmem>>, vector<16x384xf32>,
    return
  }
  func.func @transform_0(%arg0: i32) -> (i32, i32, i32) {
    %c0_i32 = arith.constant 0 : i32
    %c0_i32_0 = arith.constant 0 : i32
    %c0_i32_1 = arith.constant 0 : i32
    return %arg0, %c0_i32, %c0_i32_0 : i32, i32, i32
  }
  func.func @transform_1(%arg0: i32) -> (i32, i32) {
    %c0_i32 = arith.constant 0 : i32
    %c0_i32_0 = arith.constant 0 : i32
    %c0_i32_1 = arith.constant 0 : i32
    return %c0_i32, %c0_i32_0 : i32, i32
  }
  func.func @transform_2(%arg0: i32) -> (i32, i32) {
    %c0_i32 = arith.constant 0 : i32
    %c0_i32_0 = arith.constant 0 : i32
    %c0_i32_1 = arith.constant 0 : i32
    return %c0_i32, %c0_i32_0 : i32, i32
  }
  func.func @transform_3(%arg0: i32) -> (i32, i32) {
    %c0_i32 = arith.constant 0 : i32
    %c0_i32_0 = arith.constant 0 : i32
    %c0_i32_1 = arith.constant 0 : i32
    return %c0_i32, %c0_i32_0 : i32, i32
  }
  func.func @transform_4(%arg0: i32) -> (i32, i32) {
    %c0_i32 = arith.constant 0 : i32
    %c0_i32_0 = arith.constant 0 : i32
    %c0_i32_1 = arith.constant 0 : i32
    return %c0_i32, %c0_i32_0 : i32, i32
  }
  func.func @transform_5(%arg0: i32) -> (i32, i32) {
    %c0_i32 = arith.constant 0 : i32
    %c0_i32_0 = arith.constant 0 : i32
    return %arg0, %c0_i32 : i32, i32
  }
}

</mosaic_0001>

<bundles_post_ra>
// kernel: tpu_custom_call.1
= control target key start
LH: loop header
LB: loop body
LE: loop exit
PB: predicated region body
PF: predicated region fallthrough
CT: control target
= control target key end

     0   :  { %10 = vsyncpa [#allocation3], 0  ;;  %s1034_s0 = inlined_call_operand.hbm [shape: bf16[16,16,128], index: 0, kind: input, shape index: {}]   ;;  %s1035_s1 = inlined_call_operand.hbm [shape: bf16[16,16], index: 1, kind: input, shape index: {}]   ;;  %s1036_s2 = inlined_call_operand.vmem [shape: f32[1,16], index: 2, kind: input, shape index: {}]   ;;  %s1037_s3 = inlined_call_operand.hbm [shape: bf16[16,384], index: 3, kind: input, shape index: {}]   ;;  %s1038_s4 = inlined_call_operand.vmem [shape: f32[1,384], index: 4, kind: input, shape index: {}]   ;;  %s1039_s5 = inlined_call_operand.hbm [shape: f32[16,384], index: 5, kind: output, shape index: {}]  }
   0x1   :  { %11 = vsyncpa [#allocation6], 0 }
   0x2   :  { %12 = vsyncpa [#allocation4], 0  ;;  %s891_s18 = smov [#allocation5]   ;;  %s892_s20 = smov [#allocation2]  }
   0x3   :  { %s30_s19 = sshll.u32 %s891_s18, 4  ;;  %s18_s21 = sshll.u32 %s892_s20, 4  ;;  %s31_s19 = int_to_ptr.vmem [resolvable:$true] %s30_s19  ;;  %s19_s21 = int_to_ptr.vmem [resolvable:$true] %s18_s21 }
   0x4   :  { %s813_s22 = scalar_lea.vmem %s31_s19, 128  ;;  %p818_p1 = scmp.lt.s32.totalorder %s31_s19, %s31_s19 }
   0x5   :  { %p814_p0 = scmp.ne.s32.totalorder %s31_s19, %s813_s22  ;;  %p819_p2 = scmp.lt.s32.totalorder %s813_s22, %s813_s22 }
   0x7   :  { %p820_p3 = por %p819_p2, %p818_p1 }
   0x9   :  { %p821_p4 = pnand %p820_p3, %p814_p0 }
   0xb   :  { %824 = shalt.err (!%p821_p4)
}
   0xc   :  { %s893_s23 = smov 64   ;;  %s894_s24 = smov 4  }
   0xd   :  { %36 = dma.hbm_to_vmem [thread:$0]  %s1035_s1, 128, %s31_s19, [#allocation6], %s893_s23, %s893_s23, %s894_s24  }
   0xe   :  { %s833_s27 = scalar_lea.vmem %s19_s21, 2048  ;;  %p838_p6 = scmp.lt.s32.totalorder %s19_s21, %s19_s21 }
   0xf   :  { %p834_p5 = scmp.ne.s32.totalorder %s19_s21, %s833_s27  ;;  %p839_p7 = scmp.lt.s32.totalorder %s833_s27, %s833_s27 }
  0x11   :  { %p840_p8 = por %p839_p7, %p838_p6 }
  0x13   :  { %p841_p9 = pnand %p840_p8, %p834_p5 }
  0x15   :  { %844 = shalt.err (!%p841_p9)
}
  0x16   :  { %24 = dma.hbm_to_vmem [thread:$0]  %s1034_s0, 2048, %s19_s21, [#allocation3], %s893_s23, %s893_s23, %s894_s24  }
  0x17   :  { %s895_s30 = smov [#allocation7]  }
  0x18   :  { %s44_s6 = sshll.u32 %s895_s30, 4  ;;  %s45_s6 = int_to_ptr.vmem [resolvable:$true] %s44_s6 }
  0x19   :  { %s853_s7 = scalar_lea.vmem %s45_s6, 384  ;;  %p858_p11 = scmp.lt.s32.totalorder %s45_s6, %s45_s6 }
  0x1a   :  { %p854_p10 = scmp.ne.s32.totalorder %s45_s6, %s853_s7  ;;  %p859_p12 = scmp.lt.s32.totalorder %s853_s7, %s853_s7 }
  0x1c   :  { %p860_p13 = por %p859_p12, %p858_p11 }
  0x1e   :  { %p861_p0 = pnand %p860_p13, %p854_p10 }
  0x20   :  { %864 = shalt.err (!%p861_p0)
}
  0x21   :  { %s896_s1 = smov 192   ;;  %s897_s8 = smov 12  }
  0x22   :  { %50 = dma.hbm_to_vmem [thread:$0]  %s1037_s3, 384, %s45_s6, [#allocation6], %s896_s1, %s896_s1, %s897_s8  }
  0x23   :  { %885 = dma.done.wait [#allocation3], 2048  }
  0x24   :  { %886 = vsyncadd [#allocation3], 4294965248 }
  0x25   :  { %887 = dma.done.wait [#allocation6], 512  }
  0x26   :  { %888 = vsyncadd [#allocation6], 4294966784  ;;  %v752_v0 = vld [vmem:[#allocation2 + $0x8] sm:$0xff]   ;;  %v689_v1 = vld [vmem:[#allocation2] sm:$0xff]   ;;  %v898_v49 = vmov 0.0   ;;  %vm899_vm0 = vmmov 0   ;;  %v296_v62 = vlaneseq }
  0x27   :  { %v694_v2 = vunpack.c.l.bf16 %v752_v0  ;;  %v690_v3 = vunpack.c.l.bf16 %v689_v1  ;;  %v695_v4 = vunpack.c.h.bf16 %v752_v0  ;;  %v691_v5 = vunpack.c.h.bf16 %v689_v1  ;;  %v759_v6 = vld [vmem:[#allocation2 + $0x40] sm:$0xff]   ;;  %v760_v9 = vld [vmem:[#allocation2 + $0x48] sm:$0xff]   ;;  %v753_v12 = vld [vmem:[#allocation2 + $0x10] sm:$0xff]   ;;  %771 = vmatprep.subr.bf16.mxu0 %v898_v49  ;;  %773 = vmatprep.mubr.msk.bf16.mxu0 %vm899_vm0, %v898_v49  ;;  %s901_s12 = smov [#allocation8]  }
  0x28   :  { %v723_v7 = vunpack.c.h.bf16 %v759_v6  ;;  %v722_v8 = vunpack.c.l.bf16 %v759_v6  ;;  %v727_v10 = vunpack.c.h.bf16 %v760_v9  ;;  %v726_v11 = vunpack.c.l.bf16 %v760_v9  ;;  %v761_v15 = vld [vmem:[#allocation2 + $0x50] sm:$0xff]   ;;  %v754_v18 = vld [vmem:[#allocation2 + $0x18] sm:$0xff]   ;;  %v755_v24 = vld [vmem:[#allocation2 + $0x20] sm:$0xff]   ;;  %s665_s13 = sshll.u32 %s901_s12, 4  ;;  %s666_s13 = int_to_ptr.vmem [resolvable:$true] %s665_s13 }
  0x29   :  { %131 = vadd.xlane.f32.xlu1 %v694_v2  ;;  %127 = vadd.xlane.f32.xlu0 %v690_v3  ;;  %v699_v13 = vunpack.c.h.bf16 %v753_v12  ;;  %v698_v14 = vunpack.c.l.bf16 %v753_v12  ;;  %v731_v16 = vunpack.c.h.bf16 %v761_v15  ;;  %v730_v17 = vunpack.c.l.bf16 %v761_v15  ;;  %v762_v21 = vld [vmem:[#allocation2 + $0x58] sm:$0xff]   ;;  %v763_v27 = vld [vmem:[#allocation2 + $0x60] sm:$0xff]   ;;  %v756_v30 = vld [vmem:[#allocation2 + $0x28] sm:$0xff]   ;;  %p870_p2 = scmp.lt.s32.totalorder %s666_s13, %s666_s13 }
  0x2a   :  { %v703_v19 = vunpack.c.h.bf16 %v754_v18  ;;  %v702_v20 = vunpack.c.l.bf16 %v754_v18  ;;  %v735_v22 = vunpack.c.h.bf16 %v762_v21  ;;  %v734_v23 = vunpack.c.l.bf16 %v762_v21  ;;  %v764_v33 = vld [vmem:[#allocation2 + $0x68] sm:$0xff]   ;;  %v757_v36 = vld [vmem:[#allocation2 + $0x30] sm:$0xff]   ;;  %v758_v42 = vld [vmem:[#allocation2 + $0x38] sm:$0xff]  }
  0x2b   :  { %v707_v25 = vunpack.c.h.bf16 %v755_v24  ;;  %v706_v26 = vunpack.c.l.bf16 %v755_v24  ;;  %v739_v28 = vunpack.c.h.bf16 %v763_v27  ;;  %v738_v29 = vunpack.c.l.bf16 %v763_v27  ;;  %v765_v39 = vld [vmem:[#allocation2 + $0x70] sm:$0xff]   ;;  %v766_v45 = vld [vmem:[#allocation2 + $0x78] sm:$0xff]   ;;  %v796_v48 = vld [vmem:[#allocation5] sm:$0xff]  }
  0x2c   :  { %v711_v31 = vunpack.c.h.bf16 %v756_v30  ;;  %v710_v32 = vunpack.c.l.bf16 %v756_v30  ;;  %v743_v34 = vunpack.c.h.bf16 %v764_v33  ;;  %v742_v35 = vunpack.c.l.bf16 %v764_v33  ;;  %772 = vmatpush3.bf16.msra.mxu0 %v796_v48 }
  0x2d   :  { %133 = vadd.xlane.f32.xlu1 %v695_v4  ;;  %129 = vadd.xlane.f32.xlu0 %v691_v5  ;;  %v715_v37 = vunpack.c.h.bf16 %v757_v36  ;;  %v714_v38 = vunpack.c.l.bf16 %v757_v36  ;;  %v747_v40 = vunpack.c.h.bf16 %v765_v39  ;;  %v746_v41 = vunpack.c.l.bf16 %v765_v39 }
  0x2e   :  { %v719_v43 = vunpack.c.h.bf16 %v758_v42  ;;  %v718_v44 = vunpack.c.l.bf16 %v758_v42  ;;  %v751_v46 = vunpack.c.h.bf16 %v766_v45  ;;  %v750_v47 = vunpack.c.l.bf16 %v766_v45  ;;  %777 = vmatprep.subr.bf16.mxu0 %v898_v49 }
  0x2f   :  { %v297_v1 = vand.u32 127, %v296_v62  ;;  %vm307_vm1 = vcmask 130112   ;;  %vm444_vm2 = vcmask 1041409   ;;  %vm446_vm3 = vcmask 1042434  }
  0x30   :  { %vm448_vm4 = vcmask 1043459   ;;  %vm450_vm5 = vcmask 1044484   ;;  %vm452_vm6 = vcmask 1045509   ;;  %vm454_vm7 = vcmask 1046534  }
  0x31   :  { %161 = vadd.xlane.f32.xlu1 %v723_v7  ;;  %159 = vadd.xlane.f32.xlu0 %v722_v8  ;;  %v947_v8 = vshrl.u32 %v296_v62, 7  ;;  %v302_v9 = vadd.s32 4294967288, %v297_v1  ;;  %vm456_vm8 = vcmask 1047559   ;;  %vm472_vm9 = vcmask 130048  }
  0x33   :  { %v953_v21 = vsub.s32 %v302_v9, %v947_v8 }
  0x35   :  { %165 = vadd.xlane.f32.xlu1 %v727_v10  ;;  %163 = vadd.xlane.f32.xlu0 %v726_v11 }
  0x39   :  { %137 = vadd.xlane.f32.xlu1 %v699_v13  ;;  %135 = vadd.xlane.f32.xlu0 %v698_v14 }
  0x3d   :  { %169 = vadd.xlane.f32.xlu1 %v731_v16  ;;  %167 = vadd.xlane.f32.xlu0 %v730_v17 }
  0x41   :  { %141 = vadd.xlane.f32.xlu1 %v703_v19  ;;  %139 = vadd.xlane.f32.xlu0 %v702_v20  ;;  %v950_v20 = vsub.s32 %v297_v1, %v947_v8 }
  0x45   :  { %173 = vadd.xlane.f32.xlu1 %v735_v22  ;;  %171 = vadd.xlane.f32.xlu0 %v734_v23 }
  0x49   :  { %145 = vadd.xlane.f32.xlu1 %v707_v25  ;;  %143 = vadd.xlane.f32.xlu0 %v706_v26 }
  0x4d   :  { %177 = vadd.xlane.f32.xlu1 %v739_v28  ;;  %175 = vadd.xlane.f32.xlu0 %v738_v29 }
  0x51   :  { %149 = vadd.xlane.f32.xlu1 %v711_v31  ;;  %147 = vadd.xlane.f32.xlu0 %v710_v32 }
  0x55   :  { %181 = vadd.xlane.f32.xlu1 %v743_v34  ;;  %179 = vadd.xlane.f32.xlu0 %v742_v35 }
  0x59   :  { %153 = vadd.xlane.f32.xlu1 %v715_v37  ;;  %151 = vadd.xlane.f32.xlu0 %v714_v38 }
  0x5d   :  { %185 = vadd.xlane.f32.xlu1 %v747_v40  ;;  %183 = vadd.xlane.f32.xlu0 %v746_v41 }
  0x61   :  { %157 = vadd.xlane.f32.xlu1 %v719_v43  ;;  %155 = vadd.xlane.f32.xlu0 %v718_v44 }
  0x65   :  { %189 = vadd.xlane.f32.xlu1 %v751_v46  ;;  %187 = vadd.xlane.f32.xlu0 %v750_v47 }
  0xb2   :  { %v132_v50 = vpop.xlane.xlu1 %131  ;;  %v128_v51 = vpop.xlane.xlu0 %127 }
  0xb3   :  { %v193_v4 = vmul.f32 0.0078125, %v132_v50  ;;  %v191_v7 = vmul.f32 0.0078125, %v128_v51 }
  0xb6   :  { %v134_v52 = vpop.xlane.xlu1 %133  ;;  %v130_v53 = vpop.xlane.xlu0 %129 }
  0xb7   :  { %v194_v2 = vmul.f32 0.0078125, %v134_v52  ;;  %v192_v3 = vmul.f32 0.0078125, %v130_v53 }
  0xb9   :  { %v227_v10 = vpack.c.bf16 %v194_v2, %v193_v4  ;;  %v226_v11 = vpack.c.bf16 %v192_v3, %v191_v7 }
  0xba   :  { %v162_v54 = vpop.xlane.xlu1 %161  ;;  %v160_v55 = vpop.xlane.xlu0 %159 }
  0xbb   :  { %v208_v12 = vmul.f32 0.0078125, %v162_v54  ;;  %v207_v13 = vmul.f32 0.0078125, %v160_v55  ;;  %v266_v22 = vunpack.c.l.b16 %v227_v10  ;;  %v267_v23 = vunpack.c.h.b16 %v227_v10 }
  0xbc   :  { %v264_v24 = vunpack.c.l.b16 %v226_v11  ;;  %v265_v25 = vunpack.c.h.b16 %v226_v11 }
  0xbd   :  { %v234_v26 = vpack.c.bf16 %v208_v12, %v207_v13  ;;  %v312_v33 = vrot.slane %v266_v22, %v950_v20  ;;  %v316_v34 = vrot.slane %v267_v23, %v953_v21 }
  0xbe   :  { %v166_v56 = vpop.xlane.xlu1 %165  ;;  %v164_v57 = vpop.xlane.xlu0 %163  ;;  %v301_v37 = vrot.slane %v264_v24, %v950_v20  ;;  %v306_v38 = vrot.slane %v265_v25, %v953_v21 }
  0xbf   :  { %v210_v14 = vmul.f32 0.0078125, %v166_v56  ;;  %v209_v15 = vmul.f32 0.0078125, %v164_v57  ;;  %v280_v39 = vunpack.c.l.b16 %v234_v26  ;;  %v281_v40 = vunpack.c.h.b16 %v234_v26 }
  0xc0   :  { %v317_v50 = vsel %vm307_vm1, %v316_v34, %v312_v33  ;;  %v308_v51 = vsel %vm307_vm1, %v306_v38, %v301_v37 }
  0xc1   :  { %v235_v27 = vpack.c.bf16 %v210_v14, %v209_v15  ;;  %v375_v52 = vrot.slane %v280_v39, %v950_v20  ;;  %v379_v53 = vrot.slane %v281_v40, %v953_v21  ;;  %v445_v25 = vsel %vm444_vm2, %v317_v50, %v308_v51 }
  0xc2   :  { %v138_v58 = vpop.xlane.xlu1 %137  ;;  %v136_v59 = vpop.xlane.xlu0 %135 }
  0xc3   :  { %v196_v18 = vmul.f32 0.0078125, %v138_v58  ;;  %v195_v19 = vmul.f32 0.0078125, %v136_v59  ;;  %v282_v41 = vunpack.c.l.b16 %v235_v27  ;;  %v283_v42 = vunpack.c.h.b16 %v235_v27 }
  0xc4   :  { %v380_v26 = vsel %vm307_vm1, %v379_v53, %v375_v52 }
  0xc5   :  { %v228_v30 = vpack.c.bf16 %v196_v18, %v195_v19  ;;  %v384_v54 = vrot.slane %v282_v41, %v950_v20  ;;  %v388_v55 = vrot.slane %v283_v42, %v953_v21 }
  0xc6   :  { %v170_v60 = vpop.xlane.xlu1 %169  ;;  %v168_v61 = vpop.xlane.xlu0 %167 }
  0xc7   :  { %v212_v31 = vmul.f32 0.0078125, %v170_v60  ;;  %v211_v32 = vmul.f32 0.0078125, %v168_v61  ;;  %v268_v45 = vunpack.c.l.b16 %v228_v30  ;;  %v269_v46 = vunpack.c.h.b16 %v228_v30 }
  0xc8   :  { %v389_v11 = vsel %vm307_vm1, %v388_v55, %v384_v54 }
  0xc9   :  { %v236_v47 = vpack.c.bf16 %v212_v31, %v211_v32  ;;  %v321_v60 = vrot.slane %v268_v45, %v950_v20  ;;  %v325_v61 = vrot.slane %v269_v46, %v953_v21 }
  0xca   :  { %v142_v63 = vpop.xlane.xlu1 %141  ;;  %v140_v0 = vpop.xlane.xlu0 %139 }
  0xcb   :  { %v198_v35 = vmul.f32 0.0078125, %v142_v63  ;;  %v197_v36 = vmul.f32 0.0078125, %v140_v0  ;;  %v284_v62 = vunpack.c.l.b16 %v236_v47  ;;  %v285_v63 = vunpack.c.h.b16 %v236_v47 }
  0xcc   :  { %v326_v15 = vsel %vm307_vm1, %v325_v61, %v321_v60 }
  0xcd   :  { %v229_v48 = vpack.c.bf16 %v198_v35, %v197_v36  ;;  %v393_v18 = vrot.slane %v284_v62, %v950_v20  ;;  %v447_v30 = vsel %vm446_vm3, %v326_v15, %v445_v25 }
  0xce   :  { %v174_v5 = vpop.xlane.xlu1 %173  ;;  %v172_v6 = vpop.xlane.xlu0 %171 }
  0xcf   :  { %v214_v56 = vmul.f32 0.0078125, %v174_v5  ;;  %v213_v57 = vmul.f32 0.0078125, %v172_v6  ;;  %v270_v0 = vunpack.c.l.b16 %v229_v48  ;;  %v271_v1 = vunpack.c.h.b16 %v229_v48 }
  0xd1   :  { %v237_v5 = vpack.c.bf16 %v214_v56, %v213_v57  ;;  %v334_v23 = vrot.slane %v271_v1, %v953_v21 }
  0xd2   :  { %v146_v16 = vpop.xlane.xlu1 %145  ;;  %v144_v17 = vpop.xlane.xlu0 %143 }
  0xd3   :  { %v200_v2 = vmul.f32 0.0078125, %v146_v16  ;;  %v199_v3 = vmul.f32 0.0078125, %v144_v17  ;;  %v397_v16 = vrot.slane %v285_v63, %v953_v21  ;;  %v330_v17 = vrot.slane %v270_v0, %v950_v20 }
  0xd4   :  { %v286_v31 = vunpack.c.l.b16 %v237_v5  ;;  %v287_v35 = vunpack.c.h.b16 %v237_v5 }
  0xd5   :  { %v230_v24 = vpack.c.bf16 %v200_v2, %v199_v3  ;;  %v398_v39 = vsel %vm307_vm1, %v397_v16, %v393_v18  ;;  %v335_v40 = vsel %vm307_vm1, %v334_v23, %v330_v17 }
  0xd6   :  { %v178_v28 = vpop.xlane.xlu1 %177  ;;  %v176_v29 = vpop.xlane.xlu0 %175  ;;  %v402_v47 = vrot.slane %v286_v31, %v950_v20  ;;  %v406_v54 = vrot.slane %v287_v35, %v953_v21  ;;  %v449_v23 = vsel %vm448_vm4, %v335_v40, %v447_v30 }
  0xd7   :  { %v216_v4 = vmul.f32 0.0078125, %v178_v28  ;;  %v215_v7 = vmul.f32 0.0078125, %v176_v29  ;;  %v458_v29 = vsel %vm444_vm2, %v389_v11, %v380_v26  ;;  %v272_v41 = vunpack.c.l.b16 %v230_v24 }
  0xd8   :  { %v273_v42 = vunpack.c.h.b16 %v230_v24 }
  0xd9   :  { %v238_v27 = vpack.c.bf16 %v216_v4, %v215_v7 }
  0xda   :  { %v150_v43 = vpop.xlane.xlu1 %149  ;;  %v148_v44 = vpop.xlane.xlu0 %147  ;;  %v343_v62 = vrot.slane %v273_v42, %v953_v21 }
  0xdb   :  { %v202_v9 = vmul.f32 0.0078125, %v150_v43  ;;  %v201_v10 = vmul.f32 0.0078125, %v148_v44  ;;  %v288_v43 = vunpack.c.l.b16 %v238_v27  ;;  %v289_v44 = vunpack.c.h.b16 %v238_v27 }
  0xdd   :  { %v231_v28 = vpack.c.bf16 %v202_v9, %v201_v10  ;;  %v411_v63 = vrot.slane %v288_v43, %v950_v20  ;;  %v415_v0 = vrot.slane %v289_v44, %v953_v21 }
  0xde   :  { %v182_v58 = vpop.xlane.xlu1 %181  ;;  %v180_v59 = vpop.xlane.xlu0 %179 }
  0xdf   :  { %v218_v6 = vmul.f32 0.0078125, %v182_v58  ;;  %v217_v12 = vmul.f32 0.0078125, %v180_v59  ;;  %v274_v45 = vunpack.c.l.b16 %v231_v28  ;;  %v275_v48 = vunpack.c.h.b16 %v231_v28 }
  0xe0   :  { %v339_v58 = vrot.slane %v272_v41, %v950_v20  ;;  %v416_v24 = vsel %vm307_vm1, %v415_v0, %v411_v63 }
  0xe1   :  { %v239_v32 = vpack.c.bf16 %v218_v6, %v217_v12  ;;  %v348_v1 = vrot.slane %v274_v45, %v950_v20  ;;  %v352_v2 = vrot.slane %v275_v48, %v953_v21  ;;  %v900_v48 = vmov 0  }
  0xe2   :  { %v154_v13 = vpop.xlane.xlu1 %153  ;;  %v152_v14 = vpop.xlane.xlu0 %151  ;;  %v344_v16 = vsel %vm307_vm1, %v343_v62, %v339_v58  ;;  %602 = vmatprep.mubr.bf16.mxu1 %v900_v48 }
  0xe3   :  { %v204_v19 = vmul.f32 0.0078125, %v154_v13  ;;  %v203_v22 = vmul.f32 0.0078125, %v152_v14  ;;  %v290_v50 = vunpack.c.l.b16 %v239_v32  ;;  %v291_v51 = vunpack.c.h.b16 %v239_v32 }
  0xe4   :  { %v353_v27 = vsel %vm307_vm1, %v352_v2, %v348_v1 }
  0xe5   :  { %v232_v36 = vpack.c.bf16 %v204_v19, %v203_v22  ;;  %v420_v3 = vrot.slane %v290_v50, %v950_v20  ;;  %v424_v4 = vrot.slane %v291_v51, %v953_v21  ;;  %v459_v19 = vsel %vm446_vm3, %v398_v39, %v458_v29  ;;  %v678_v50 = vld [vmem:[%s1036_s2] ss:$0 sm:$0xff] }
  0xe6   :  { %v186_v33 = vpop.xlane.xlu1 %185  ;;  %v184_v34 = vpop.xlane.xlu0 %183  ;;  %v407_v22 = vsel %vm307_vm1, %v406_v54, %v402_v47  ;;  %v800_v47 = vld [vmem:[#allocation7] ss:$12 sps:$4 sm:$0xff]  }
  0xe7   :  { %v220_v37 = vmul.f32 0.0078125, %v186_v33  ;;  %v219_v38 = vmul.f32 0.0078125, %v184_v34  ;;  %v276_v55 = vunpack.c.l.b16 %v232_v36  ;;  %v277_v56 = vunpack.c.h.b16 %v232_v36 }
  0xe8   :  { %v425_v28 = vsel %vm307_vm1, %v424_v4, %v420_v3  ;;  %v460_v29 = vsel %vm448_vm4, %v407_v22, %v459_v19  ;;  %v451_v33 = vsel %vm450_vm5, %v344_v16, %v449_v23  ;;  %v538_v3 = vsub.s32 0, %v947_v8 }
  0xe9   :  { %v240_v46 = vpack.c.bf16 %v220_v37, %v219_v38  ;;  %v357_v11 = vrot.slane %v276_v55, %v950_v20  ;;  %v361_v5 = vrot.slane %v277_v56, %v953_v21  ;;  %v461_v35 = vsel %vm450_vm5, %v416_v24, %v460_v29 }
  0xea   :  { %v158_v52 = vpop.xlane.xlu1 %157  ;;  %v156_v53 = vpop.xlane.xlu0 %155  ;;  %v453_v39 = vsel %vm452_vm6, %v353_v27, %v451_v33  ;;  %v462_v40 = vsel %vm452_vm6, %v425_v28, %v461_v35  ;;  %v546_v4 = vsub.s32 2, %v947_v8 }
  0xeb   :  { %v206_v57 = vmul.f32 0.0078125, %v158_v52  ;;  %v292_v59 = vunpack.c.l.b16 %v240_v46  ;;  %v293_v60 = vunpack.c.h.b16 %v240_v46  ;;  %v205_v61 = vmul.f32 0.0078125, %v156_v53  ;;  %v797_v46 = vld [vmem:[#allocation7 + $0x8] ss:$12 sps:$4 sm:$0xff]  }
  0xec   :  { %v362_v34 = vsel %vm307_vm1, %v361_v5, %v357_v11 }
  0xed   :  { %v233_v7 = vpack.c.bf16 %v206_v57, %v205_v61  ;;  %v429_v13 = vrot.slane %v292_v59, %v950_v20  ;;  %v433_v14 = vrot.slane %v293_v60, %v953_v21  ;;  %v455_v42 = vsel %vm454_vm7, %v362_v34, %v453_v39 }
  0xee   :  { %v190_v9 = vpop.xlane.xlu1 %189  ;;  %v188_v10 = vpop.xlane.xlu0 %187 }
  0xef   :  { %v222_v6 = vmul.f32 0.0078125, %v190_v9  ;;  %v221_v12 = vmul.f32 0.0078125, %v188_v10  ;;  %v278_v15 = vunpack.c.l.b16 %v233_v7  ;;  %v279_v18 = vunpack.c.h.b16 %v233_v7  ;;  %v533_v7 = vld [vmem:[%s1038_s4] sm:$0x7]  ;;  %s865_s4 = scalar_lea.vmem %s666_s13, 768 }
  0xf0   :  { %v434_v30 = vsel %vm307_vm1, %v433_v14, %v429_v13  ;;  %v542_v9 = vsub.s32 1, %v947_v8  ;;  %v539_v10 = vrot.slane %v533_v7, %v538_v3  ;;  %v547_v11 = vrot.slane %v533_v7, %v546_v4  ;;  %p866_p1 = scmp.ne.s32.totalorder %s666_s13, %s865_s4  ;;  %p871_p3 = scmp.lt.s32.totalorder %s865_s4, %s865_s4 }
  0xf1   :  { %v241_v17 = vpack.c.bf16 %v222_v6, %v221_v12  ;;  %v366_v25 = vrot.slane %v278_v15, %v950_v20  ;;  %v370_v26 = vrot.slane %v279_v18, %v953_v21  ;;  %v463_v43 = vsel %vm454_vm7, %v434_v30, %v462_v40 }
  0xf2   :  { %v543_v5 = vrot.slane %v533_v7, %v542_v9  ;;  %p872_p4 = por %p871_p3, %p870_p2 }
  0xf3   :  { %v294_v31 = vunpack.c.l.b16 %v241_v17  ;;  %v295_v32 = vunpack.c.h.b16 %v241_v17  ;;  %v371_v38 = vsel %vm307_vm1, %v370_v26, %v366_v25 }
  0xf4   :  { %v457_v44 = vsel %vm456_vm8, %v371_v38, %v455_v42  ;;  %p873_p5 = pnand %p872_p4, %p866_p1 }
  0xf5   :  { %v438_v36 = vrot.slane %v294_v31, %v950_v20  ;;  %v442_v37 = vrot.slane %v295_v32, %v953_v21  ;;  %v798_v21 = vld [vmem:[#allocation7 + $0x4] ss:$12 sps:$4 sm:$0xff]  }
  0xf6   :  { %584 = vmatprep.subr.bf16.mxu1 %v798_v21 }
  0xf7   :  { %v443_v41 = vsel %vm307_vm1, %v442_v37, %v438_v36  ;;  %585 = vmatpush1.bf16.msra.mxu1 %v800_v47 }
  0xf8   :  { %v464_v45 = vsel %vm456_vm8, %v443_v41, %v463_v43 }
  0xf9   :  { %v465_v20 = vpack.c.b16 %v464_v45, %v457_v44 }
  0xfb   :  { %774 = vmatmul.mubr.msk.bf16.vlgmr.msra.gmra.mxu0 %vm472_vm9, %v465_v20 }
  0xfc   :  { %779 = vmatprep.mubr.msk.bf16.mxu0 %vm899_vm0, %v898_v49  ;;  %778 = vmatpush3.bf16.msra.mxu0 %v797_v46 }
 0x1bb   :  { %v510_v51 = vpop.f32.mrf.mxu0 }
 0x1bc   :  { %v511_v52 = vadd.f32 %v678_v50, %v510_v51 }
 0x1bd   :  { %v775_v53 = vpop.f32.mrf.mxu0 }
 0x1be   :  { %v519_v54 = vmin.f32 %v511_v52, 0.0  ;;  %vm517_vm10 = vcmp.gt.f32.partialorder %v511_v52, 0.0 }
 0x1bf   :  { %v513_v55 = vpop.f32.mrf.mxu0 }
 0x1c0   :  { %v521_v56 = vmul.f32 1.442695, %v519_v54  ;;  %v514_v57 = vadd.f32 %v678_v50, %v513_v55 }
 0x1c1   :  { %v776_v49 = vpop.f32.mrf.mxu0 }
 0x1c2   :  { %801 = vpow2.f32 %v521_v56  ;;  %v520_v58 = vmin.f32 %v514_v57, 0.0  ;;  %vm518_vm11 = vcmp.gt.f32.partialorder %v514_v57, 0.0 }
 0x1c4   :  { %v523_v59 = vmul.f32 1.442695, %v520_v58 }
 0x1c6   :  { %803 = vpow2.f32 %v523_v59 }
 0x1cf   :  { %v802_v60 = vpop.eup %801 }
 0x1d0   :  { %v681_v61 = vadd.f32 -1.0, %v802_v60 }
 0x1d2   :  { %v527_v0 = vsel %vm517_vm10, %v511_v52, %v681_v61 }
 0x1d3   :  { %v804_v62 = vpop.eup %803 }
 0x1d4   :  { %v682_v63 = vadd.f32 -1.0, %v804_v62 }
 0x1d6   :  { %v528_v1 = vsel %vm518_vm11, %v514_v57, %v682_v63 }
 0x1d7   :  { %v534_v2 = vpack.c.bf16 %v528_v1, %v527_v0 }
 0x1d9   :  { %686 = vmatmul.mubr.msk.bf16.vlgmr.msra.gmra.mxu1 %vm472_vm9, %v534_v2  ;;  %780 = vmatmul.mubr.msk.bf16.vlgmr.msra.gmra.mxu0 %vm472_vm9, %v534_v2 }
 0x299   :  { %v604_v6 = vpop.f32.mrf.mxu1  ;;  %v647_v12 = vpop.f32.mrf.mxu0 }
 0x29a   :  { %v605_v13 = vadd.f32 %v604_v6, %v539_v10  ;;  %v648_v14 = vadd.f32 %v647_v12, %v547_v11 }
 0x29b   :  { %v606_v15 = vpop.f32.mrf.mxu1  ;;  %v781_v18 = vpop.f32.mrf.mxu0 }
 0x29c   :  { %654 = vst [vmem:[#allocation8] sm:$0xff] %v605_v13  ;;  %656 = vst [vmem:[#allocation8 + $0x10] sm:$0xff] %v648_v14  ;;  %v607_v19 = vadd.f32 %v606_v15, %v543_v5 }
 0x29d   :  { %v608_v22 = vpop.f32.mrf.mxu1  ;;  %v650_v16 = vpop.f32.mrf.mxu0 }
 0x29e   :  { %655 = vst [vmem:[#allocation8 + $0x8] sm:$0xff] %v607_v19  ;;  %v609_v17 = vadd.f32 %v608_v22, %v539_v10  ;;  %v651_v23 = vadd.f32 %v650_v16, %v547_v11 }
 0x29f   :  { %v610_v8 = vpop.f32.mrf.mxu1  ;;  %v782_v24 = vpop.f32.mrf.mxu0 }
 0x2a0   :  { %657 = vst [vmem:[#allocation8 + $0x18] sm:$0xff] %v609_v17  ;;  %659 = vst [vmem:[#allocation8 + $0x28] sm:$0xff] %v651_v23  ;;  %v611_v25 = vadd.f32 %v610_v8, %v543_v5 }
 0x2a2   :  { %658 = vst [vmem:[#allocation8 + $0x20] sm:$0xff] %v611_v25 }
 0x2a3   :  { %876 = shalt.err (!%p873_p5)
}
 0x2a4   :  { %s902_s14 = smov 384   ;;  %s903_s15 = smov 24  }
 0x2a5   :  { %671 = dma.vmem_to_hbm [thread:$0]  %s666_s13, 768, %s1039_s5, [#allocation4], %s902_s14, %s902_s14, %s903_s15  }
 0x2a6   :  { %889 = dma.done.wait [#allocation4], 768  }
 0x2a7   :  { %890 = vsyncadd [#allocation4], 4294966528 }
 0x2a8   :  { %675 = vsyncpa [#allocation3], 1 }
 0x2a9   :  { %676 = vsyncpa [#allocation6], 1 }
 0x2aa   :  { %677 = vsyncpa [#allocation4], 1 }

</bundles_post_ra>
